<compile_context>
chip_gen: v6e
topology: v6e:2x2x1
jax: 0.10.0
libtpu: 0.0.40
codegen_flags: <defaults>
</compile_context>

<pallas_src>
import jax
import jax.numpy as jnp
from jax.experimental import pallas as pl
from jax.experimental.pallas import tpu as pltpu


def _mlp_kernel(x_ref, w1_ref, b1_ref, w2_ref, b2_ref, w3_ref, b3_ref, o_ref):
    """One batch tile. x_ref: [50, TB] bf16 (features on sublanes, batch on lanes)."""
    x = x_ref[...]                                                        # bf16 [50, TB]

    # fc1 + ReLU  (bf16 MXU inputs, f32 accumulation, f32 elementwise)
    h1 = jnp.dot(w1_ref[...], x, preferred_element_type=jnp.float32) + b1_ref[...]
    h1 = jnp.maximum(h1, 0.0).astype(jnp.bfloat16)                        # [25, TB]

    # fc2 + ReLU
    h2 = jnp.dot(w2_ref[...], h1, preferred_element_type=jnp.float32) + b2_ref[...]
    h2 = jnp.maximum(h2, 0.0).astype(jnp.bfloat16)                        # [10, TB]

    # fc3 (no activation)
    h3 = jnp.dot(w3_ref[...], h2, preferred_element_type=jnp.float32) + b3_ref[...]
    o_ref[...] = h3.astype(o_ref.dtype)                                   # f32 [2, TB]


def brainwave_forward(x, params, tb=512):
    """x: [B, 50] float32 (PyTorch layout). Returns [B, 2] float32."""
    w1, b1, w2, b2, w3, b3 = params
    B = x.shape[0]

    # Batch-tile size: lane-multiple tiles for large B; a single full-extent block
    # (always legal) for small B.
    TB = tb if B >= tb else B
    n_tiles = pl.cdiv(B, TB)
    Bp = n_tiles * TB

    # Lane-dense layout: batch on the last (lane) axis; bf16 inputs halve HBM bytes.
    x_t = x.T.astype(jnp.bfloat16)                       # [50, B]
    if Bp != B:
        x_t = jnp.pad(x_t, ((0, 0), (0, Bp - B)))        # zero-pad extra batch columns

    w1b = w1.astype(jnp.bfloat16)
    w2b = w2.astype(jnp.bfloat16)
    w3b = w3.astype(jnp.bfloat16)

    def resident(a):  # full-array block, same block every grid step -> stays in VMEM
        return pl.BlockSpec(a.shape, lambda i: (0,) * a.ndim)

    out_t = pl.pallas_call(
        _mlp_kernel,
        out_shape=jax.ShapeDtypeStruct((2, Bp), jnp.float32),
        grid=(n_tiles,),
        in_specs=[
            pl.BlockSpec((50, TB), lambda i: (0, i)),    # x batch tile (pipelined)
            resident(w1b), resident(b1),                 # weights / biases stay put
            resident(w2b), resident(b2),
            resident(w3b), resident(b3),
        ],
        out_specs=pl.BlockSpec((2, TB), lambda i: (0, i)),
        compiler_params=pltpu.CompilerParams(dimension_semantics=("parallel",)),
    )(x_t, w1b, b1, w2b, b2, w3b, b3)

    return out_t[:, :B].T                                # [B, 2]


def init_params(key):
    """nn.Linear-style init: U(-1/sqrt(fan_in), +1/sqrt(fan_in)).

    Weights are stored PyTorch-native [out, in]; biases as [out, 1] so they
    broadcast along the lane (batch) axis inside the kernel.
    """
    def linear(key, fan_in, fan_out):
        kw, kb = jax.random.split(key)
        bound = 1.0 / jnp.sqrt(jnp.float32(fan_in))
        w = jax.random.uniform(kw, (fan_out, fan_in), jnp.float32, -bound, bound)
        b = jax.random.uniform(kb, (fan_out, 1), jnp.float32, -bound, bound)
        return w, b

    k1, k2, k3 = jax.random.split(key, 3)
    w1, b1 = linear(k1, 50, 25)
    w2, b2 = linear(k2, 25, 10)
    w3, b3 = linear(k3, 10, 2)
    return (w1, b1, w2, b2, w3, b3)


if __name__ == "__main__":
    key = jax.random.PRNGKey(0)
    kx, kp = jax.random.split(key)
    params = init_params(kp)
    w1, b1, w2, b2, w3, b3 = params

    def ref_forward(x):  # plain-JAX f32 reference, same math as the PyTorch forward
        h = jnp.maximum(x @ w1.T + b1.T, 0.0)
        h = jnp.maximum(h @ w2.T + b2.T, 0.0)
        return h @ w3.T + b3.T

    # Small deterministic check (matches the module's tiny-batch usage).
    B = 8
    x = jax.random.normal(kx, (B, 50), dtype=jnp.float32)
    out = jax.block_until_ready(brainwave_forward(x, params))
    assert out.shape == (B, 2)
    assert jnp.allclose(out, ref_forward(x), atol=2e-2, rtol=2e-2)  # bf16 inputs

    # Larger batch exercises the tiled/padded pipeline path (TB=512, grid=(2,)).
    B2 = 1000
    x2 = jax.random.normal(jax.random.PRNGKey(1), (B2, 50), dtype=jnp.float32)
    out2 = jax.block_until_ready(brainwave_forward(x2, params))
    assert out2.shape == (B2, 2)
    assert jnp.allclose(out2, ref_forward(x2), atol=2e-2, rtol=2e-2)

    print("KERNEL_OK")
</pallas_src>

<mosaic_0001>
module attributes {stable_mosaic.version = 11 : i64} {
  func.func @_mlp_kernel(%arg0: i32, %arg1: memref<50x8xbf16, #tpu.memory_space<vmem>>, %arg2: memref<25x50xbf16, #tpu.memory_space<vmem>>, %arg3: memref<25x1xf32, #tpu.memory_space<vmem>>, %arg4: memref<10x25xbf16, #tpu.memory_space<vmem>>, %arg5: memref<10x1xf32, #tpu.memory_space<vmem>>, %arg6: memref<2x10xbf16, #tpu.memory_space<vmem>>, %arg7: memref<2x1xf32, #tpu.memory_space<vmem>>, %arg8: memref<2x8xf32, #tpu.memory_space<vmem>>) attributes {dimension_semantics = [#tpu.dimension_semantics<parallel>], iteration_bounds = array<i64: 1>, scalar_prefetch = 0 : i64, scratch_operands = 0 : i64, tpu.core_type = #tpu.core_type<tc>, window_params = [{transform_indices = @transform_0, window_bounds = array<i64: 50, 8>}, {pipeline_mode = #tpu.pipeline_mode<synchronous>, transform_indices = @transform_1, window_bounds = array<i64: 25, 50>}, {pipeline_mode = #tpu.pipeline_mode<synchronous>, transform_indices = @transform_2, window_bounds = array<i64: 25, 1>}, {pipeline_mode = #tpu.pipeline_mode<synchronous>, transform_indices = @transform_3, window_bounds = array<i64: 10, 25>}, {pipeline_mode = #tpu.pipeline_mode<synchronous>, transform_indices = @transform_4, window_bounds = array<i64: 10, 1>}, {pipeline_mode = #tpu.pipeline_mode<synchronous>, transform_indices = @transform_5, window_bounds = array<i64: 2, 10>}, {pipeline_mode = #tpu.pipeline_mode<synchronous>, transform_indices = @transform_6, window_bounds = array<i64: 2, 1>}, {transform_indices = @transform_7, window_bounds = array<i64: 2, 8>}]} {
    %c0 = arith.constant 0 : index
    %c0_0 = arith.constant 0 : index
    %0 = vector.load %arg1[%c0, %c0_0] : memref<50x8xbf16, #tpu.memory_space<vmem>>, vector<50x8xbf16>
    %c0_1 = arith.constant 0 : index
    %c0_2 = arith.constant 0 : index
    %1 = vector.load %arg2[%c0_1, %c0_2] : memref<25x50xbf16, #tpu.memory_space<vmem>>, vector<25x50xbf16>
    %cst = arith.constant dense<0.000000e+00> : vector<25x8xf32>
    %2 = tpu.matmul %1, %0, %cst {dimension_numbers = #tpu.dot_dimension_numbers<[1], [0], [0], [1], [0, 0, 1, 1], [], []>} : vector<25x50xbf16>, vector<50x8xbf16>, vector<25x8xf32> -> vector<25x8xf32>
    %c0_3 = arith.constant 0 : index
    %c0_4 = arith.constant 0 : index
    %3 = vector.load %arg3[%c0_3, %c0_4] : memref<25x1xf32, #tpu.memory_space<vmem>>, vector<25x1xf32>
    %4 = vector.broadcast %3 : vector<25x1xf32> to vector<25x8xf32>
    %5 = arith.addf %2, %4 : vector<25x8xf32>
    %cst_5 = arith.constant 0.000000e+00 : f32
    %6 = vector.broadcast %cst_5 : f32 to vector<25x8xf32>
    %7 = arith.maximumf %5, %6 : vector<25x8xf32>
    %8 = arith.truncf %7 : vector<25x8xf32> to vector<25x8xbf16>
    %c0_6 = arith.constant 0 : index
    %c0_7 = arith.constant 0 : index
    %9 = vector.load %arg4[%c0_6, %c0_7] : memref<10x25xbf16, #tpu.memory_space<vmem>>, vector<10x25xbf16>
    %cst_8 = arith.constant dense<0.000000e+00> : vector<10x8xf32>
    %10 = tpu.matmul %9, %8, %cst_8 {dimension_numbers = #tpu.dot_dimension_numbers<[1], [0], [0], [1], [0, 0, 1, 1], [], []>} : vector<10x25xbf16>, vector<25x8xbf16>, vector<10x8xf32> -> vector<10x8xf32>
    %c0_9 = arith.constant 0 : index
    %c0_10 = arith.constant 0 : index
    %11 = vector.load %arg5[%c0_9, %c0_10] : memref<10x1xf32, #tpu.memory_space<vmem>>, vector<10x1xf32>
    %12 = vector.broadcast %11 : vector<10x1xf32> to vector<10x8xf32>
    %13 = arith.addf %10, %12 : vector<10x8xf32>
    %cst_11 = arith.constant 0.000000e+00 : f32
    %14 = vector.broadcast %cst_11 : f32 to vector<10x8xf32>
    %15 = arith.maximumf %13, %14 : vector<10x8xf32>
    %16 = arith.truncf %15 : vector<10x8xf32> to vector<10x8xbf16>
    %c0_12 = arith.constant 0 : index
    %c0_13 = arith.constant 0 : index
    %17 = vector.load %arg6[%c0_12, %c0_13] : memref<2x10xbf16, #tpu.memory_space<vmem>>, vector<2x10xbf16>
    %cst_14 = arith.constant dense<0.000000e+00> : vector<2x8xf32>
    %18 = tpu.matmul %17, %16, %cst_14 {dimension_numbers = #tpu.dot_dimension_numbers<[1], [0], [0], [1], [0, 0, 1, 1], [], []>} : vector<2x10xbf16>, vector<10x8xbf16>, vector<2x8xf32> -> vector<2x8xf32>
    %c0_15 = arith.constant 0 : index
    %c0_16 = arith.constant 0 : index
    %19 = vector.load %arg7[%c0_15, %c0_16] : memref<2x1xf32, #tpu.memory_space<vmem>>, vector<2x1xf32>
    %20 = vector.broadcast %19 : vector<2x1xf32> to vector<2x8xf32>
    %21 = arith.addf %18, %20 : vector<2x8xf32>
    %c0_17 = arith.constant 0 : index
    %c0_18 = arith.constant 0 : index
    %22 = vector.load %arg8[%c0_17, %c0_18] : memref<2x8xf32, #tpu.memory_space<vmem>>, vector<2x8xf32>
    tpu.vector_store %arg8[%c0_17, %c0_18], %21 {strides = array<i32>} : memref<2x8xf32, #tpu.memory_space<vmem>>, vector<2x8xf32>,
    return
  }
  func.func @transform_0(%arg0: i32) -> (i32, i32) {
    %c0_i32 = arith.constant 0 : i32
    %c0_i32_0 = arith.constant 0 : i32
    return %c0_i32, %arg0 : i32, i32
  }
  func.func @transform_1(%arg0: i32) -> (i32, i32) {
    %c0_i32 = arith.constant 0 : i32
    %c0_i32_0 = arith.constant 0 : i32
    %c0_i32_1 = arith.constant 0 : i32
    return %c0_i32, %c0_i32_0 : i32, i32
  }
  func.func @transform_2(%arg0: i32) -> (i32, i32) {
    %c0_i32 = arith.constant 0 : i32
    %c0_i32_0 = arith.constant 0 : i32
    %c0_i32_1 = arith.constant 0 : i32
    return %c0_i32, %c0_i32_0 : i32, i32
  }
  func.func @transform_3(%arg0: i32) -> (i32, i32) {
    %c0_i32 = arith.constant 0 : i32
    %c0_i32_0 = arith.constant 0 : i32
    %c0_i32_1 = arith.constant 0 : i32
    return %c0_i32, %c0_i32_0 : i32, i32
  }
  func.func @transform_4(%arg0: i32) -> (i32, i32) {
    %c0_i32 = arith.constant 0 : i32
    %c0_i32_0 = arith.constant 0 : i32
    %c0_i32_1 = arith.constant 0 : i32
    return %c0_i32, %c0_i32_0 : i32, i32
  }
  func.func @transform_5(%arg0: i32) -> (i32, i32) {
    %c0_i32 = arith.constant 0 : i32
    %c0_i32_0 = arith.constant 0 : i32
    %c0_i32_1 = arith.constant 0 : i32
    return %c0_i32, %c0_i32_0 : i32, i32
  }
  func.func @transform_6(%arg0: i32) -> (i32, i32) {
    %c0_i32 = arith.constant 0 : i32
    %c0_i32_0 = arith.constant 0 : i32
    %c0_i32_1 = arith.constant 0 : i32
    return %c0_i32, %c0_i32_0 : i32, i32
  }
  func.func @transform_7(%arg0: i32) -> (i32, i32) {
    %c0_i32 = arith.constant 0 : i32
    %c0_i32_0 = arith.constant 0 : i32
    return %c0_i32, %arg0 : i32, i32
  }
}

</mosaic_0001>

<bundles_post_ra>
// kernel: tpu_custom_call.1
= control target key start
LH: loop header
LB: loop body
LE: loop exit
PB: predicated region body
PF: predicated region fallthrough
CT: control target
= control target key end

     0   :  { %vm101_vm0 = vcmask 1040384   ;;  %vm94_vm1 = vcmask 408576   ;;  %v389_v5 = vmov 0   ;;  %s488_s0 = inlined_call_operand.vmem [shape: bf16[50,8], index: 0, kind: input, shape index: {}]   ;;  %s489_s1 = inlined_call_operand.vmem [shape: bf16[25,50], index: 1, kind: input, shape index: {}]   ;;  %s490_s2 = inlined_call_operand.vmem [shape: f32[25,1], index: 2, kind: input, shape index: {}]   ;;  %s491_s3 = inlined_call_operand.vmem [shape: bf16[10,25], index: 3, kind: input, shape index: {}]   ;;  %s492_s4 = inlined_call_operand.vmem [shape: f32[10,1], index: 4, kind: input, shape index: {}]   ;;  %s493_s5 = inlined_call_operand.vmem [shape: bf16[2,10], index: 5, kind: input, shape index: {}]   ;;  %s494_s6 = inlined_call_operand.vmem [shape: f32[2,1], index: 6, kind: input, shape index: {}]   ;;  %s495_s7 = inlined_call_operand.hbm [shape: f32[2,8], index: 7, kind: output, shape index: {}]  }
   0x1   :  { %v360_v0 = vld [vmem:[%s488_s0 + $0x18] ss:$0 sps:$4 sm:$0x11]   ;;  %v361_v1 = vld [vmem:[%s488_s0 + $0x10] sm:$0xff]   ;;  %v362_v3 = vld [vmem:[%s488_s0 + $0x8] sm:$0xff]   ;;  %358 = vset.pattern.permute.xlu0 %v389_v5  ;;  %359 = vset.pattern.permute.xlu1 %v389_v5 }
   0x2   :  { %352 = vmatprep.subr.msk.bf16.mxu0 %vm101_vm0, %v360_v0  ;;  %v103_v2 = vsel %vm101_vm0, %v360_v0, 0  ;;  %v364_v4 = vld [vmem:[%s489_s1] sm:$0xff]   ;;  %v41_v6 = vld [vmem:[%s490_s2 + $0x10] sm:$0xff]  ;;  %v42_v9 = vld [vmem:[%s490_s2 + $0x18] sm:$0x1] }
   0x3   :  { %327 = vmatpush3.bf16.msra.mxu0 %v103_v2  ;;  %334 = vmatprep.mubr.msk.bf16.mxu0 %vm94_vm1, %v364_v4  ;;  %v363_v7 = vld [vmem:[%s488_s0] sm:$0xff]   ;;  %v40_v10 = vld [vmem:[%s490_s2 + $0x8] sm:$0xff] }
   0x4   :  { %328 = vmatprep.subr.bf16.mxu0 %v361_v1  ;;  %55 = vperm.xlu0 %358, %v41_v6   ;;  %v39_v8 = vld [vmem:[%s490_s2] sm:$0xff] }
   0x5   :  { %45 = vperm.xlu1 %359, %v39_v8  }
   0x7   :  { %329 = vmatpush3.bf16.msra.mxu0 %v361_v1 }
   0x8   :  { %330 = vmatprep.subr.bf16.mxu0 %v362_v3 }
   0x9   :  { %12 = vsyncpa [#allocation3], 0  ;;  %60 = vperm.xlu0 %358, %v42_v9   ;;  %v162_v11 = vld [vmem:[%s492_s4] sm:$0xff]  ;;  %50 = vperm.xlu1 %359, %v40_v10   ;;  %v163_v12 = vld [vmem:[%s492_s4 + $0x8] sm:$0x3]  ;;  %v390_v15 = vmov 0.0  }
   0xa   :  { %v365_v13 = vld [vmem:[%s489_s1 + $0x8] sm:$0x1f]   ;;  %v235_v14 = vld [vmem:[%s494_s6] sm:$0x3]  ;;  %338 = vmatprep.subr.bf16.mxu1 %v390_v15  ;;  %vm391_vm2 = vmmov 0   ;;  %vm183_vm3 = vcmask 1043456  }
   0xb   :  { %331 = vmatpush3.bf16.msra.mxu0 %v362_v3  ;;  %342 = vmatprep.mubr.msk.bf16.mxu1 %vm391_vm2, %v390_v15  ;;  %vm184_vm4 = vcmask 1044480   ;;  %v392_v24 = vmov 65535   ;;  %v366_v38 = vld [vmem:[%s491_s3] sm:$0x1f]   ;;  %vm179_vm5 = vcmask 203776   ;;  %vm241_vm6 = vcmask 80896  }
   0xc   :  { %332 = vmatprep.subr.bf16.mxu0 %v363_v7  ;;  %v185_v25 = vsel %vm183_vm3, 4294967295, %v392_v24  ;;  %v234_v51 = vld [vmem:[%s493_s5] sm:$0x1]  ;;  %s393_s25 = smov [#allocation2]   ;;  %vm288_vm7 = vcmask 58368  }
   0xd   :  { %166 = vperm.xlu0 %358, %v162_v11   ;;  %171 = vperm.xlu1 %359, %v163_v12   ;;  %v186_v31 = vsel %vm184_vm4, %v185_v25, 0  ;;  %s296_s26 = sshll.u32 %s393_s25, 4  ;;  %s297_s26 = int_to_ptr.vmem [resolvable:$true] %s296_s26 }
   0xe   :  { %s367_s27 = scalar_lea.vmem %s297_s26, 32  ;;  %p372_p1 = scmp.lt.s32.totalorder %s297_s26, %s297_s26 }
   0xf   :  { %333 = vmatpush3.bf16.msra.mxu0 %v363_v7  ;;  %p368_p0 = scmp.ne.s32.totalorder %s297_s26, %s367_s27  ;;  %p373_p2 = scmp.lt.s32.totalorder %s367_s27, %s367_s27 }
  0x11   :  { %238 = vperm.xlu0 %358, %v235_v14   ;;  %p374_p3 = por %p373_p2, %p372_p1 }
  0x12   :  { %335 = vmatmul.mubr.msk.bf16.vlgmr.msra.gmra.mxu0 %vm94_vm1, %v365_v13 }
  0x13   :  { %p375_p4 = pnand %p374_p3, %p368_p0 }
  0x7f   :  { %v56_v16 = vpop.permute.xlu0 %55 }
  0x80   :  { %v46_v17 = vpop.permute.xlu1 %45 }
  0x84   :  { %v61_v21 = vpop.permute.xlu0 %60  ;;  %v51_v26 = vpop.permute.xlu1 %50 }
  0x88   :  { %v167_v40 = vpop.permute.xlu0 %166  ;;  %v172_v43 = vpop.permute.xlu1 %171 }
  0x8c   :  { %v239_v52 = vpop.permute.xlu0 %238 }
  0xd2   :  { %v336_v18 = vpop.f32.mrf.mxu0 }
  0xd3   :  { %v148_v20 = vadd.f32 %v336_v18, %v56_v16 }
  0xd4   :  { %v139_v19 = vpop.f32.mrf.mxu0 }
  0xd5   :  { %v156_v28 = vmax.f32 %v148_v20, 0.0  ;;  %v140_v32 = vadd.f32 %v139_v19, %v46_v17 }
  0xd6   :  { %v337_v22 = vpop.f32.mrf.mxu0 }
  0xd7   :  { %v151_v23 = vadd.f32 %v337_v22, %v61_v21  ;;  %v154_v36 = vmax.f32 %v140_v32, 0.0 }
  0xd8   :  { %v142_v27 = vpop.f32.mrf.mxu0 }
  0xd9   :  { %v157_v29 = vmax.f32 %v151_v23, 0.0  ;;  %v143_v30 = vadd.f32 %v142_v27, %v51_v26 }
  0xdb   :  { %v159_v33 = vpack.c.bf16 %v157_v29, %v156_v28  ;;  %v155_v34 = vmax.f32 %v143_v30, 0.0 }
  0xdd   :  { %v188_v35 = vand.u32 %v186_v31, %v159_v33  ;;  %v158_v37 = vpack.c.bf16 %v155_v34, %v154_v36 }
  0xdf   :  { %339 = vmatpush3.bf16.msra.mxu1 %v188_v35 }
  0xe0   :  { %340 = vmatprep.subr.bf16.mxu1 %v390_v15 }
  0xe3   :  { %341 = vmatpush3.bf16.msra.mxu1 %v158_v37 }
  0xe4   :  { %346 = vmatprep.subr.bf16.mxu1 %v390_v15 }
  0xe6   :  { %343 = vmatmul.mubr.msk.bf16.vlgmr.msra.gmra.mxu1 %vm179_vm5, %v366_v38 }
  0xe7   :  { %348 = vmatprep.mubr.msk.bf16.mxu1 %vm391_vm2, %v390_v15 }
 0x1a6   :  { %v224_v39 = vpop.f32.mrf.mxu1 }
 0x1a7   :  { %v225_v42 = vadd.f32 %v224_v39, %v167_v40 }
 0x1a8   :  { %v344_v41 = vpop.f32.mrf.mxu1 }
 0x1a9   :  { %v231_v47 = vmax.f32 %v225_v42, 0.0 }
 0x1aa   :  { %v227_v44 = vpop.f32.mrf.mxu1 }
 0x1ab   :  { %v228_v45 = vadd.f32 %v227_v44, %v172_v43 }
 0x1ac   :  { %v345_v46 = vpop.f32.mrf.mxu1 }
 0x1ad   :  { %v232_v48 = vmax.f32 %v228_v45, 0.0 }
 0x1af   :  { %v233_v49 = vpack.c.bf16 %v232_v48, %v231_v47 }
 0x1b1   :  { %v246_v50 = vsel %vm184_vm4, %v233_v49, 0 }
 0x1b2   :  { %347 = vmatpush3.bf16.msra.mxu1 %v246_v50 }
 0x1b5   :  { %349 = vmatmul.mubr.msk.bf16.vlgmr.msra.gmra.mxu1 %vm241_vm6, %v234_v51 }
 0x275   :  { %v282_v53 = vpop.f32.mrf.mxu1 }
 0x276   :  { %v283_v54 = vadd.f32 %v282_v53, %v239_v52 }
 0x277   :  { %v350_v55 = vpop.f32.mrf.mxu1 }
 0x278   :  { %289 = vst.msk [vmem:[#allocation2] sm:$0x3] %vm288_vm7, %v283_v54 }
 0x279   :  { %v285_v56 = vpop.f32.mrf.mxu1 }
 0x27a   :  { %378 = shalt.err (!%p375_p4)
}
 0x27b   :  { %299 = dma.vmem_to_hbm [thread:$0]  %s297_s26, 32, %s495_s7, [#allocation3]   ;;  %v351_v57 = vpop.f32.mrf.mxu1 }
 0x27c   :  { %387 = dma.done.wait [#allocation3], 32  }
 0x27d   :  { %388 = vsyncadd [#allocation3], 4294967264 }
 0x27e   :  { %303 = vsyncpa [#allocation3], 1 }

</bundles_post_ra>
